<compile_context>
chip_gen: v6e
topology: v6e:2x2x1
jax: 0.10.0
libtpu: 0.0.40
codegen_flags: <defaults>
</compile_context>

<pallas_src>
import functools

import jax
import jax.numpy as jnp
from jax.experimental import pallas as pl
from jax.experimental.pallas import tpu as pltpu

_LANES = 128
_SUBLANES = 8


def _round_up(x, m):
    return ((x + m - 1) // m) * m


def _mcml_kernel(x_ref, t_ref, *rest, uncertain_label, total, tile_rows,
                 tiles_per_core, has_pad, with_cert):
    if with_cert:
        main_ref, cert_ref, acc_main, acc_cert = rest
    else:
        main_ref, acc_main = rest
        cert_ref = acc_cert = None

    i = pl.program_id(1)

    @pl.when(i == 0)
    def _():
        acc_main[...] = jnp.zeros_like(acc_main)
        if with_cert:
            acc_cert[...] = jnp.zeros_like(acc_cert)

    x = x_ref[...].astype(jnp.float32)
    t = t_ref[...].astype(jnp.float32)

    certain = (t != uncertain_label).astype(jnp.float32)

    # Numerically stable softplus(x) = max(x, 0) + log1p(exp(-|x|))
    sp = jnp.maximum(x, 0.0) + jnp.log1p(jnp.exp(-jnp.abs(x)))

    # -[t*logsig(x) + (1-t)*logsig(-x)] * certain  ==  certain * (softplus(x) - t*x)
    main_elem = certain * (sp - t * x)
    if with_cert:
        # -(1-certain) * [logsig(x) + logsig(-x)] == (1-certain) * (2*softplus(x) - x)
        cert_elem = (1.0 - certain) * (2.0 * sp - x)

    if has_pad:
        c = pl.program_id(0)
        block_start = (c * tiles_per_core + i) * (tile_rows * _LANES)
        row_ids = jax.lax.broadcasted_iota(jnp.int32, (tile_rows, _LANES), 0)
        lane_ids = jax.lax.broadcasted_iota(jnp.int32, (tile_rows, _LANES), 1)
        flat_idx = block_start + row_ids * _LANES + lane_ids
        valid = (flat_idx < total).astype(jnp.float32)
        main_elem = main_elem * valid
        if with_cert:
            cert_elem = cert_elem * valid

    # VPU-only elementwise accumulation; the expensive cross-lane reduce happens
    # exactly once per core, in the epilogue below.
    acc_main[...] += main_elem
    if with_cert:
        acc_cert[...] += cert_elem

    @pl.when(i == pl.num_programs(1) - 1)
    def _():
        main_ref[...] = jnp.sum(acc_main[...], keepdims=True)
        if with_cert:
            cert_ref[...] = jnp.sum(acc_cert[...], keepdims=True)


def multiclass_multilabel_loss(output, target, uncertain_label,
                               penalize_certainity=False, *,
                               max_tile_rows=512, num_cores=2):
    """Pallas implementation of MultiClassMultiLabelLoss.forward."""
    N, C = output.shape
    assert target.shape == (N, C)
    total = N * C

    # ---- lane-dense flattened layout ---------------------------------------
    rows_needed = pl.cdiv(total, _LANES)
    cores = num_cores if rows_needed >= num_cores * _SUBLANES else 1
    rows_per_core = _round_up(pl.cdiv(rows_needed, cores), _SUBLANES)
    tile_rows = min(_round_up(max_tile_rows, _SUBLANES), rows_per_core)
    tiles_per_core = pl.cdiv(rows_per_core, tile_rows)
    padded_rows = cores * tiles_per_core * tile_rows
    padded_total = padded_rows * _LANES
    has_pad = padded_total != total

    x_flat = output.reshape(-1)
    t_flat = target.reshape(-1)
    if has_pad:
        pad = padded_total - total
        x_flat = jnp.pad(x_flat, (0, pad))
        t_flat = jnp.pad(t_flat, (0, pad))
    x2d = x_flat.reshape(padded_rows, _LANES)
    t2d = t_flat.reshape(padded_rows, _LANES)

    with_cert = bool(penalize_certainity)

    kernel = functools.partial(
        _mcml_kernel,
        uncertain_label=float(uncertain_label),
        total=total,
        tile_rows=tile_rows,
        tiles_per_core=tiles_per_core,
        has_pad=has_pad,
        with_cert=with_cert)

    in_spec = pl.BlockSpec((tile_rows, _LANES),
                           lambda c, i: (c * tiles_per_core + i, 0))
    out_spec = pl.BlockSpec((1, 1), lambda c, i: (c, 0))
    out_struct = jax.ShapeDtypeStruct((cores, 1), jnp.float32)

    if with_cert:
        out_shape = (out_struct, out_struct)
        out_specs = (out_spec, out_spec)
        scratch = [pltpu.VMEM((tile_rows, _LANES), jnp.float32),
                   pltpu.VMEM((tile_rows, _LANES), jnp.float32)]
    else:
        out_shape = (out_struct,)
        out_specs = (out_spec,)
        scratch = [pltpu.VMEM((tile_rows, _LANES), jnp.float32)]

    results = pl.pallas_call(
        kernel,
        out_shape=out_shape,
        grid_spec=pltpu.PrefetchScalarGridSpec(
            num_scalar_prefetch=0,
            grid=(cores, tiles_per_core),
            in_specs=[in_spec, in_spec],
            out_specs=out_specs,
            scratch_shapes=scratch),
        compiler_params=pltpu.CompilerParams(
            # leading axis shards across TensorCores on v7x; reduction axis last
            dimension_semantics=("parallel", "arbitrary"),
            # explicit, generation-safe scoped-VMEM budget (fits v5e default too)
            vmem_limit_bytes=32 * 1024 * 1024),
    )(x2d, t2d)

    denom = jnp.float32(total)
    main_loss = jnp.sum(results[0]) / denom
    if with_cert:
        return main_loss + jnp.float32(0.1) * (jnp.sum(results[1]) / denom)
    return main_loss


def _reference_loss(output, target, uncertain_label, penalize_certainity=False):
    """Pure-JAX reference mirroring torch.nn.MultiLabelSoftMarginLoss."""
    x = output.astype(jnp.float32)
    t = target.astype(jnp.float32)
    certain = (t != uncertain_label).astype(jnp.float32)
    ls_pos = jax.nn.log_sigmoid(x)
    ls_neg = jax.nn.log_sigmoid(-x)

    def mlsml(tt, w):
        loss = -(tt * ls_pos + (1.0 - tt) * ls_neg) * w
        return jnp.mean(jnp.sum(loss, axis=-1) / x.shape[-1])

    main = mlsml(t, certain)
    if not penalize_certainity:
        return main
    w2 = 1.0 - certain
    return main + 0.1 * (mlsml(jnp.ones_like(x), w2) + mlsml(jnp.zeros_like(x), w2))


if __name__ == "__main__":
    UNCERTAIN = -1.0
    key = jax.random.PRNGKey(0)

    # Case 1: small CheXpert-like setup (16 samples, 14 labels) -> single block.
    # Case 2: larger batch -> exercises padding mask + two-core "parallel" split.
    for N, C in [(16, 14), (300, 14)]:
        k_out, k_tgt, key = jax.random.split(key, 3)
        output = jax.random.normal(k_out, (N, C), dtype=jnp.float32)
        tgt_idx = jax.random.randint(k_tgt, (N, C), 0, 3)
        target = jnp.where(tgt_idx == 2, UNCERTAIN, tgt_idx.astype(jnp.float32))

        loss = multiclass_multilabel_loss(output, target, UNCERTAIN,
                                          penalize_certainity=False)
        loss_pen = multiclass_multilabel_loss(output, target, UNCERTAIN,
                                              penalize_certainity=True)
        jax.block_until_ready((loss, loss_pen))

        ref = _reference_loss(output, target, UNCERTAIN, False)
        ref_pen = _reference_loss(output, target, UNCERTAIN, True)
        assert jnp.allclose(loss, ref, atol=1e-5), (N, C, loss, ref)
        assert jnp.allclose(loss_pen, ref_pen, atol=1e-5), (N, C, loss_pen, ref_pen)

    print("KERNEL_OK")
</pallas_src>

<mosaic_0001>
module attributes {stable_mosaic.version = 11 : i64} {
  func.func @_mcml_kernel(%arg0: i32, %arg1: i32, %arg2: memref<8x128xf32, #tpu.memory_space<vmem>>, %arg3: memref<8x128xf32, #tpu.memory_space<vmem>>, %arg4: memref<1x1xf32, #tpu.memory_space<vmem>>, %arg5: memref<8x128xf32, #tpu.memory_space<vmem>>) attributes {dimension_semantics = [#tpu.dimension_semantics<parallel>, #tpu.dimension_semantics<arbitrary>], iteration_bounds = array<i64: 1, 1>, scalar_prefetch = 0 : i64, scratch_operands = 1 : i64, tpu.core_type = #tpu.core_type<tc>, window_params = [{transform_indices = @transform_0, window_bounds = array<i64: 8, 128>}, {transform_indices = @transform_1, window_bounds = array<i64: 8, 128>}, {transform_indices = @transform_2, window_bounds = array<i64: 1, 1>}]} {
    %c0_i32 = arith.constant 0 : i32
    %0 = arith.cmpi eq, %arg1, %c0_i32 : i32
    %1 = arith.extui %0 : i1 to i32
    %c0_i32_0 = arith.constant 0 : i32
    %2 = arith.cmpi ne, %1, %c0_i32_0 : i32
    scf.if %2 {
      %cst_12 = arith.constant 0.000000e+00 : f32
      %41 = vector.broadcast %cst_12 : f32 to vector<8x128xf32>
      %c0_13 = arith.constant 0 : index
      %c0_14 = arith.constant 0 : index
      %42 = vector.load %arg5[%c0_13, %c0_14] : memref<8x128xf32, #tpu.memory_space<vmem>>, vector<8x128xf32>
      tpu.vector_store %arg5[%c0_13, %c0_14], %41 {strides = array<i32>} : memref<8x128xf32, #tpu.memory_space<vmem>>, vector<8x128xf32>,
    } else {
    }
    %c0 = arith.constant 0 : index
    %c0_1 = arith.constant 0 : index
    %3 = vector.load %arg2[%c0, %c0_1] : memref<8x128xf32, #tpu.memory_space<vmem>>, vector<8x128xf32>
    %c0_2 = arith.constant 0 : index
    %c0_3 = arith.constant 0 : index
    %4 = vector.load %arg3[%c0_2, %c0_3] : memref<8x128xf32, #tpu.memory_space<vmem>>, vector<8x128xf32>
    %cst = arith.constant -1.000000e+00 : f32
    %5 = vector.broadcast %cst : f32 to vector<8x128xf32>
    %6 = arith.cmpf one, %4, %5 : vector<8x128xf32>
    %7 = arith.extui %6 : vector<8x128xi1> to vector<8x128xi32>
    %8 = arith.sitofp %7 : vector<8x128xi32> to vector<8x128xf32>
    %cst_4 = arith.constant 0.000000e+00 : f32
    %9 = vector.broadcast %cst_4 : f32 to vector<8x128xf32>
    %10 = arith.maximumf %3, %9 : vector<8x128xf32>
    %11 = math.absf %3 : vector<8x128xf32>
    %cst_5 = arith.constant 0.000000e+00 : f32
    %12 = vector.broadcast %cst_5 : f32 to vector<8x128xf32>
    %13 = arith.subf %12, %11 : vector<8x128xf32>
    %14 = math.exp %13 : vector<8x128xf32>
    %15 = math.log1p %14 : vector<8x128xf32>
    %16 = arith.addf %10, %15 : vector<8x128xf32>
    %17 = arith.mulf %4, %3 : vector<8x128xf32>
    %18 = arith.subf %16, %17 : vector<8x128xf32>
    %19 = arith.mulf %8, %18 : vector<8x128xf32>
    %c1_i32 = arith.constant 1 : i32
    %20 = arith.muli %arg0, %c1_i32 : i32
    %21 = arith.addi %20, %arg1 : i32
    %c1024_i32 = arith.constant 1024 : i32
    %22 = arith.muli %21, %c1024_i32 : i32
    %23 = tpu.iota {dimensions = array<i32: 0>} : vector<8x128xi32>
    %24 = tpu.iota {dimensions = array<i32: 1>} : vector<8x128xi32>
    %c128_i32 = arith.constant 128 : i32
    %25 = vector.broadcast %c128_i32 : i32 to vector<8x128xi32>
    %26 = arith.muli %23, %25 : vector<8x128xi32>
    %27 = vector.broadcast %22 : i32 to vector<8x128xi32>
    %28 = arith.addi %27, %26 : vector<8x128xi32>
    %29 = arith.addi %28, %24 : vector<8x128xi32>
    %c224_i32 = arith.constant 224 : i32
    %30 = vector.broadcast %c224_i32 : i32 to vector<8x128xi32>
    %31 = arith.cmpi slt, %29, %30 : vector<8x128xi32>
    %32 = arith.extui %31 : vector<8x128xi1> to vector<8x128xi32>
    %33 = arith.sitofp %32 : vector<8x128xi32> to vector<8x128xf32>
    %34 = arith.mulf %19, %33 : vector<8x128xf32>
    %c0_6 = arith.constant 0 : index
    %c0_7 = arith.constant 0 : index
    %35 = vector.load %arg5[%c0_6, %c0_7] : memref<8x128xf32, #tpu.memory_space<vmem>>, vector<8x128xf32>
    %36 = arith.addf %35, %34 : vector<8x128xf32>
    %c0_8 = arith.constant 0 : index
    %c0_9 = arith.constant 0 : index
    %37 = vector.load %arg5[%c0_8, %c0_9] : memref<8x128xf32, #tpu.memory_space<vmem>>, vector<8x128xf32>
    tpu.vector_store %arg5[%c0_8, %c0_9], %36 {strides = array<i32>} : memref<8x128xf32, #tpu.memory_space<vmem>>, vector<8x128xf32>,
    %c0_i32_10 = arith.constant 0 : i32
    %38 = arith.cmpi eq, %arg1, %c0_i32_10 : i32
    %39 = arith.extui %38 : i1 to i32
    %c0_i32_11 = arith.constant 0 : i32
    %40 = arith.cmpi ne, %39, %c0_i32_11 : i32
    scf.if %40 {
      %c0_12 = arith.constant 0 : index
      %c0_13 = arith.constant 0 : index
      %41 = vector.load %arg5[%c0_12, %c0_13] : memref<8x128xf32, #tpu.memory_space<vmem>>, vector<8x128xf32>
      %42 = vector.shape_cast %41 : vector<8x128xf32> to vector<1x8x128xf32>
      %cst_14 = arith.constant dense<0.000000e+00> : vector<1xf32>
      %43 = vector.multi_reduction <add>, %42, %cst_14 [1, 2] : vector<1x8x128xf32> to vector<1xf32>
      %44 = vector.shape_cast %43 : vector<1xf32> to vector<1x1x1xf32>
      %45 = vector.extract %44[0, 0, 0] : f32 from vector<1x1x1xf32>
      %46 = vector.broadcast %45 : f32 to vector<1x1xf32>
      %c0_15 = arith.constant 0 : index
      %c0_16 = arith.constant 0 : index
      %47 = vector.load %arg4[%c0_15, %c0_16] : memref<1x1xf32, #tpu.memory_space<vmem>>, vector<1x1xf32>
      tpu.vector_store %arg4[%c0_15, %c0_16], %46 {strides = array<i32>} : memref<1x1xf32, #tpu.memory_space<vmem>>, vector<1x1xf32>,
    } else {
    }
    return
  }
  func.func @transform_0(%arg0: i32, %arg1: i32) -> (i32, i32) {
    %c1_i32 = arith.constant 1 : i32
    %0 = arith.muli %arg0, %c1_i32 : i32
    %1 = arith.addi %0, %arg1 : i32
    %c0_i32 = arith.constant 0 : i32
    %c0_i32_0 = arith.constant 0 : i32
    return %1, %c0_i32 : i32, i32
  }
  func.func @transform_1(%arg0: i32, %arg1: i32) -> (i32, i32) {
    %c1_i32 = arith.constant 1 : i32
    %0 = arith.muli %arg0, %c1_i32 : i32
    %1 = arith.addi %0, %arg1 : i32
    %c0_i32 = arith.constant 0 : i32
    %c0_i32_0 = arith.constant 0 : i32
    return %1, %c0_i32 : i32, i32
  }
  func.func @transform_2(%arg0: i32, %arg1: i32) -> (i32, i32) {
    %c0_i32 = arith.constant 0 : i32
    %c0_i32_0 = arith.constant 0 : i32
    return %arg0, %c0_i32 : i32, i32
  }
}

</mosaic_0001>

<bundles_post_ra>
// kernel: tpu_custom_call.1
= control target key start
LH: loop header
LB: loop body
LE: loop exit
PB: predicated region body
PF: predicated region fallthrough
CT: control target
= control target key end

     0   :  { %7 = vsyncpa [#allocation4], 0  ;;  %s227_s0 = inlined_call_operand.hbm [shape: f32[8,128], index: 0, kind: input, shape index: {}]   ;;  %s228_s1 = inlined_call_operand.hbm [shape: f32[8,128], index: 1, kind: input, shape index: {}]   ;;  %s229_s2 = inlined_call_operand.hbm [shape: f32[1,1], index: 2, kind: output, shape index: {}]  }
   0x1   :  { %8 = vsyncpa [#allocation7], 0 }
   0x2   :  { %9 = vsyncpa [#allocation5], 0  ;;  %s199_s9 = smov [#allocation3]   ;;  %s200_s11 = smov [#allocation6]  }
   0x3   :  { %s19_s10 = sshll.u32 %s199_s9, 4  ;;  %s32_s12 = sshll.u32 %s200_s11, 4  ;;  %s20_s10 = int_to_ptr.vmem [resolvable:$true] %s19_s10  ;;  %s33_s12 = int_to_ptr.vmem [resolvable:$true] %s32_s12 }
   0x4   :  { %s141_s13 = scalar_lea.vmem %s20_s10, 128  ;;  %p146_p1 = scmp.lt.s32.totalorder %s20_s10, %s20_s10 }
   0x5   :  { %p142_p0 = scmp.ne.s32.totalorder %s20_s10, %s141_s13  ;;  %p147_p2 = scmp.lt.s32.totalorder %s141_s13, %s141_s13 }
   0x7   :  { %p148_p3 = por %p147_p2, %p146_p1 }
   0x9   :  { %p149_p4 = pnand %p148_p3, %p142_p0 }
   0xb   :  { %152 = shalt.err (!%p149_p4)
}
   0xc   :  { %22 = dma.hbm_to_vmem [thread:$0]  %s227_s0, 128, %s20_s10, [#allocation4]  }
   0xd   :  { %s161_s16 = scalar_lea.vmem %s33_s12, 128  ;;  %p166_p6 = scmp.lt.s32.totalorder %s33_s12, %s33_s12 }
   0xe   :  { %p162_p5 = scmp.ne.s32.totalorder %s33_s12, %s161_s16  ;;  %p167_p7 = scmp.lt.s32.totalorder %s161_s16, %s161_s16 }
  0x10   :  { %p168_p8 = por %p167_p7, %p166_p6 }
  0x12   :  { %p169_p9 = pnand %p168_p8, %p162_p5 }
  0x14   :  { %172 = shalt.err (!%p169_p9)
}
  0x15   :  { %35 = dma.hbm_to_vmem [thread:$0]  %s228_s1, 128, %s33_s12, [#allocation7]  }
  0x16   :  { %193 = dma.done.wait [#allocation4], 128  }
  0x17   :  { %194 = vsyncadd [#allocation4], 4294967168 }
  0x18   :  { %195 = dma.done.wait [#allocation7], 128  }
  0x19   :  { %196 = vsyncadd [#allocation7], 4294967168  ;;  %v49_v0 = vld [vmem:[#allocation3] sm:$0xff]  ;;  %v74_v6 = vlaneseq  ;;  %v50_v13 = vld [vmem:[#allocation6] sm:$0xff]  ;;  %v201_v22 = vmov 0.0   ;;  %s202_s0 = smov [#allocation8]  }
  0x1a   :  { %v55_v1 = vand.u32 2147483647, %v49_v0  ;;  %v54_v16 = vmax.f32 %v49_v0, 0.0  ;;  %vm51_vm1 = vcmp.ne.f32.partialorder %v50_v13, -1.0  ;;  %v69_v19 = vmul.f32 %v50_v13, %v49_v0  ;;  %s111_s1 = sshll.u32 %s202_s0, 4  ;;  %s112_s1 = int_to_ptr.vmem [resolvable:$true] %s111_s1 }
  0x1b   :  { %v75_v8 = vshrl.u32 %v74_v6, 7  ;;  %v77_v11 = vand.u32 127, %v74_v6  ;;  %v121_v23 = vsel %vm51_vm1, 1.0, %v201_v22  ;;  %vm103_vm3 = vcmask 0   ;;  %s173_s20 = scalar_lea.vmem %s112_s1, 16  ;;  %s177_s21 = scalar_lea.vmem %s112_s1, 32 }
  0x1c   :  { %v56_v2 = vsub.f32 0.0, %v55_v1  ;;  %p174_p10 = scmp.ne.s32.totalorder %s112_s1, %s173_s20  ;;  %p178_p11 = scmp.lt.s32.totalorder %s112_s1, %s112_s1 }
  0x1d   :  { %v78_v12 = vmul.u32 128, %v75_v8  ;;  %p179_p12 = scmp.lt.s32.totalorder %s177_s21, %s173_s20 }
  0x1e   :  { %v57_v3 = vmul.f32 1.442695, %v56_v2 }
  0x1f   :  { %v81_v17 = vadd.s32 %v78_v12, %v77_v11  ;;  %p180_p13 = por %p179_p12, %p178_p11 }
  0x20   :  { %129 = vpow2.f32 %v57_v3 }
  0x21   :  { %vm82_vm2 = vcmp.lt.s32.totalorder %v81_v17, 224  ;;  %p181_p0 = pnand %p180_p13, %p174_p10 }
  0x22   :  { %v122_v25 = vsel %vm82_vm2, 1.0, %v201_v22 }
  0x2d   :  { %v130_v4 = vpop.eup %129 }
  0x2e   :  { %v59_v5 = vadd.f32 1.0, %v130_v4  ;;  %v62_v7 = vmul.f32 -0.5, %v130_v4  ;;  %v65_v10 = vand.u32 2147483647, %v130_v4 }
  0x30   :  { %131 = vlog2.f32 %v59_v5  ;;  %v63_v9 = vadd.f32 1.0, %v62_v7  ;;  %vm66_vm0 = vcmp.lt.f32.partialorder %v65_v10, 0.0004427343 }
  0x32   :  { %v64_v14 = vmul.f32 %v130_v4, %v63_v9 }
  0x3d   :  { %v132_v15 = vpop.eup %131 }
  0x3e   :  { %v61_v18 = vmul.f32 0.6931472, %v132_v15 }
  0x40   :  { %v67_v20 = vsel %vm66_vm0, %v64_v14, %v61_v18 }
  0x41   :  { %v68_v21 = vadd.f32 %v67_v20, %v54_v16 }
  0x43   :  { %v70_v24 = vsub.f32 %v68_v21, %v69_v19 }
  0x45   :  { %v71_v26 = vmul.f32 %v121_v23, %v70_v24 }
  0x47   :  { %v85_v27 = vmul.f32 %v122_v25, %v71_v26 }
  0x49   :  { %93 = vadd.xlane.f32.xlu0 %v85_v27 }
  0xd2   :  { %v94_v28 = vpop.xlane.xlu0 %93 }
  0xd3   :  { %v95_v29 = vrot.slane %v94_v28, 4 }
  0xd5   :  { %v96_v30 = vadd.f32 %v95_v29, %v94_v28 }
  0xd7   :  { %v97_v31 = vrot.slane %v96_v30, 2 }
  0xd9   :  { %v98_v32 = vadd.f32 %v97_v31, %v96_v30 }
  0xdb   :  { %v99_v33 = vrot.slane %v98_v32, 1 }
  0xdd   :  { %v100_v34 = vadd.f32 %v99_v33, %v98_v32 }
  0xdf   :  { %123 = vpush %v100_v34 }
 0x110   :  { %s124_s19 = spop %123 }
 0x111   :  { %v102_v35 = vstv %s124_s19 }
 0x112   :  { %104 = vst.msk [vmem:[#allocation8] sm:$0x1] %vm103_vm3, %v102_v35 }
 0x113   :  { %184 = shalt.err (!%p181_p0)
}
 0x114   :  { %114 = dma.vmem_to_hbm [thread:$0]  %s112_s1, 16, %s229_s2, [#allocation5]  }
 0x115   :  { %197 = dma.done.wait [#allocation5], 16  }
 0x116   :  { %198 = vsyncadd [#allocation5], 4294967280 }
 0x117   :  { %118 = vsyncpa [#allocation4], 1 }
 0x118   :  { %119 = vsyncpa [#allocation7], 1 }
 0x119   :  { %120 = vsyncpa [#allocation5], 1 }

</bundles_post_ra>
